<compile_context>
chip_gen: v5e
topology: v5e:2x2
jax: 0.10.0
libtpu: 0.0.40
codegen_flags: <defaults>
</compile_context>

<pallas_src>
import jax
import jax.numpy as jnp
from jax.experimental import pallas as pl
from jax.experimental.pallas import tpu as pltpu


# ----------------------------------------------------------------------------
# Conv + BN + ReLU + MaxPool block (fused im2col, one matmul per image)
# ----------------------------------------------------------------------------
def conv_block(x, p, eps=1e-5):
    """x: (N, Cin, H, W) channel-first.  Returns (N, Cout, H//2, W//2) bf16."""
    N, Cin, H, W = x.shape
    Cout = p["wconv"].shape[0]
    Cin_pad = ((Cin + 7) // 8) * 8            # sublane-aligned channel count
    Wp = W + 2                                # padded width
    Hh, Wh = H // 2, W // 2

    Lout = H * Wp                             # valid pooled-map span (flat, padded-width rows)
    Lout_pad = ((Lout + 127) // 128) * 128    # lane-dense store width (multiple of 128)
    Lz = Lout_pad + Wp + 2                    # conv positions evaluated (covers all pool taps)
    max_tap = 2 * Wp + 2                      # largest static tap offset (dh=2, dw=2)
    Lx_min = Lz + max_tap                     # flattened padded-input length the taps index
    rows_total = -(-Lx_min // Wp)             # ceil -> whole padded rows
    pad_bottom = rows_total - (H + 1)         # 1 top pad row + H valid rows + pad_bottom
    Lx = rows_total * Wp
    K = 9 * Cin_pad

    # --- XLA glue: channel pad + spatial zero-pad + flatten space; cast to bf16 -------
    xp = jnp.pad(x, ((0, 0), (0, Cin_pad - Cin), (1, pad_bottom), (1, 1)))
    xflat = xp.reshape(N, Cin_pad, Lx).astype(jnp.bfloat16)

    # --- fold conv bias + eval-mode BatchNorm into the weights / per-channel shift ----
    scale = p["gamma"] / jnp.sqrt(p["rvar"] + eps)
    shift = ((p["bconv"] - p["rmean"]) * scale + p["beta"]).astype(jnp.float32)
    shift = shift.reshape(Cout, 1)
    wf = p["wconv"] * scale[:, None, None, None]                     # (Cout,Cin,3,3)
    wf = jnp.pad(wf, ((0, 0), (0, Cin_pad - Cin), (0, 0), (0, 0)))   # (Cout,Cin_pad,3,3)
    # rows ordered (dh, dw, ci) to match the in-kernel tap concatenation below
    w_k = jnp.transpose(wf, (0, 2, 3, 1)).reshape(Cout, K).astype(jnp.bfloat16)

    tap_off = tuple(dh * Wp + dw for dh in range(3) for dw in range(3))

    def kernel(x_ref, w_ref, s_ref, o_ref):
        # fused im2col: 9 statically lane-shifted views of the flattened padded image,
        # stacked along the (sublane-aligned) contraction axis -> (9*Cin_pad, Lz)
        patches = jnp.concatenate([x_ref[:, t:t + Lz] for t in tap_off], axis=0)
        # conv as a single matmul; BN scale already folded into w_ref
        z = jnp.dot(w_ref[...], patches,
                    preferred_element_type=jnp.float32)              # (Cout, Lz)
        z = jnp.maximum(z + s_ref[...], 0.0)                         # BN shift + ReLU
        # 2x2 max-pool evaluated at every position via lane-shifted maxes; the caller
        # stride-2 down-selects the valid (even-row, even-col) entries.
        pooled = jnp.maximum(
            jnp.maximum(z[:, 0:Lout_pad], z[:, 1:Lout_pad + 1]),
            jnp.maximum(z[:, Wp:Wp + Lout_pad], z[:, Wp + 1:Wp + 1 + Lout_pad]))
        o_ref[...] = pooled.astype(o_ref.dtype)                      # unmasked lane-dense vst

    flops = 2 * N * Cout * K * Lz + 6 * N * Cout * Lout_pad
    bytes_acc = (xflat.size * 2 + w_k.size * 2 + shift.size * 4
                 + N * Cout * Lout_pad * 2)

    out = pl.pallas_call(
        kernel,
        out_shape=jax.ShapeDtypeStruct((N, Cout, Lout_pad), jnp.bfloat16),
        grid=(N,),
        in_specs=[
            pl.BlockSpec((None, Cin_pad, Lx), lambda n: (n, 0, 0)),
            pl.BlockSpec((Cout, K), lambda n: (0, 0)),
            pl.BlockSpec((Cout, 1), lambda n: (0, 0)),
        ],
        out_specs=pl.BlockSpec((None, Cout, Lout_pad), lambda n: (n, 0, 0)),
        compiler_params=pltpu.CompilerParams(
            dimension_semantics=("parallel",),
            vmem_limit_bytes=32 * 1024 * 1024,
        ),
        cost_estimate=pl.CostEstimate(flops=flops, transcendentals=0,
                                      bytes_accessed=bytes_acc),
    )(xflat, w_k, shift)

    # --- XLA glue: stride-2 down-select of the in-place pooled map --------------------
    zmap = out[:, :, :Lout].reshape(N, Cout, H, Wp)
    return zmap[:, :, 0:2 * Hh:2, 0:2 * Wh:2]                        # (N,Cout,Hh,Wh)


# ----------------------------------------------------------------------------
# Classifier: Linear -> ReLU -> (Dropout=id) -> Linear -> ReLU -> (Dropout=id) -> Linear
# ----------------------------------------------------------------------------
def mlp_kernel(x_ref, w1_ref, b1_ref, w2_ref, b2_ref, w3_ref, b3_ref, o_ref):
    h = jnp.dot(x_ref[...], w1_ref[...], preferred_element_type=jnp.float32) + b1_ref[...]
    h = jnp.maximum(h, 0.0).astype(jnp.bfloat16)          # Dropout(eval) = identity
    h = jnp.dot(h, w2_ref[...], preferred_element_type=jnp.float32) + b2_ref[...]
    h = jnp.maximum(h, 0.0).astype(jnp.bfloat16)
    o_ref[...] = jnp.dot(h, w3_ref[...], preferred_element_type=jnp.float32) + b3_ref[...]


def classifier(flat, fc):
    """flat: (N, F), already in PyTorch NCHW-flatten order.  Returns (N, 2) f32."""
    N, F = flat.shape
    pad_to = 128                                          # lane-dense logits
    w3 = jnp.pad(fc["w3"], ((0, 0), (0, pad_to - fc["w3"].shape[1])))
    b3 = jnp.pad(fc["b3"], (0, pad_to - fc["b3"].shape[0]))

    flops = 2 * N * (F * 256 + 256 * 128 + 128 * pad_to)
    bytes_acc = (2 * (N * F + F * 256 + 256 * 128 + 128 * pad_to)
                 + 4 * (256 + 128 + pad_to + N * pad_to))

    out = pl.pallas_call(
        mlp_kernel,
        out_shape=jax.ShapeDtypeStruct((N, pad_to), jnp.float32),
        compiler_params=pltpu.CompilerParams(vmem_limit_bytes=32 * 1024 * 1024),
        cost_estimate=pl.CostEstimate(flops=flops, transcendentals=0,
                                      bytes_accessed=bytes_acc),
    )(
        flat.astype(jnp.bfloat16),
        fc["w1"].astype(jnp.bfloat16), fc["b1"].reshape(1, -1).astype(jnp.float32),
        fc["w2"].astype(jnp.bfloat16), fc["b2"].reshape(1, -1).astype(jnp.float32),
        w3.astype(jnp.bfloat16), b3.reshape(1, -1).astype(jnp.float32),
    )
    return out[:, :2]


def custom_cnn_forward(x_nchw, conv_params, fc_params):
    x = x_nchw                              # stay channel-first (= PyTorch NCHW)
    for p in conv_params:
        x = conv_block(x, p)
    N = x.shape[0]
    flat = x.reshape(N, -1)                 # CHW flatten == nn.Flatten order; no transpose
    return classifier(flat, fc_params)


# ----------------------------------------------------------------------------
# Pure-JAX f32 reference (for correctness check)
# ----------------------------------------------------------------------------
def reference_forward(x_nchw, conv_params, fc_params, eps=1e-5):
    x = jnp.transpose(x_nchw, (0, 2, 3, 1))
    for p in conv_params:
        w = jnp.transpose(p["wconv"], (2, 3, 1, 0))  # HWIO
        y = jax.lax.conv_general_dilated(
            x, w, (1, 1), "SAME", dimension_numbers=("NHWC", "HWIO", "NHWC")
        ) + p["bconv"]
        y = (y - p["rmean"]) / jnp.sqrt(p["rvar"] + eps) * p["gamma"] + p["beta"]
        y = jnp.maximum(y, 0.0)
        y = jax.lax.reduce_window(y, -jnp.inf, jax.lax.max,
                                  (1, 2, 2, 1), (1, 2, 2, 1), "VALID")
        x = y
    N = x.shape[0]
    flat = jnp.transpose(x, (0, 3, 1, 2)).reshape(N, -1)   # NCHW flatten order
    h = jnp.maximum(flat @ fc_params["w1"] + fc_params["b1"], 0.0)
    h = jnp.maximum(h @ fc_params["w2"] + fc_params["b2"], 0.0)
    return h @ fc_params["w3"] + fc_params["b3"]


# ----------------------------------------------------------------------------
# Deterministic parameter init (synthetic; no checkpoint)
# ----------------------------------------------------------------------------
def init_conv_params(key, layers, in_ch=3):
    params = []
    cin = in_ch
    for cout in layers:
        key, k1, k2, k3, k4, k5, k6 = jax.random.split(key, 7)
        params.append(dict(
            wconv=0.1 * jax.random.normal(k1, (cout, cin, 3, 3), jnp.float32),
            bconv=0.1 * jax.random.normal(k2, (cout,), jnp.float32),
            gamma=1.0 + 0.1 * jax.random.normal(k3, (cout,), jnp.float32),
            beta=0.1 * jax.random.normal(k4, (cout,), jnp.float32),
            rmean=0.1 * jax.random.normal(k5, (cout,), jnp.float32),
            rvar=0.5 + jnp.abs(jax.random.normal(k6, (cout,), jnp.float32)),
        ))
        cin = cout
    return key, params


def init_fc_params(key, flat_dim):
    key, k1, k2, k3, k4, k5, k6 = jax.random.split(key, 7)
    fc = dict(
        w1=0.05 * jax.random.normal(k1, (flat_dim, 256), jnp.float32),
        b1=0.05 * jax.random.normal(k2, (256,), jnp.float32),
        w2=0.05 * jax.random.normal(k3, (256, 128), jnp.float32),
        b2=0.05 * jax.random.normal(k4, (128,), jnp.float32),
        w3=0.05 * jax.random.normal(k5, (128, 2), jnp.float32),
        b3=0.05 * jax.random.normal(k6, (2,), jnp.float32),
    )
    return key, fc


# ----------------------------------------------------------------------------
if __name__ == "__main__":
    layers = [4, 8]          # CustomCNN(layers=[4, 8])
    img = 16                 # small spatial size for the demo (module default is 150)
    in_ch = 3
    N = 2

    key = jax.random.PRNGKey(0)
    key, kx = jax.random.split(key)
    x = jax.random.normal(kx, (N, in_ch, img, img), jnp.float32)   # NCHW, like PyTorch

    key, conv_params = init_conv_params(key, layers, in_ch)
    flat_dim = layers[-1] * (img // 2 ** len(layers)) ** 2          # matches module formula
    key, fc_params = init_fc_params(key, flat_dim)

    fwd = jax.jit(custom_cnn_forward)
    out = fwd(x, conv_params, fc_params)
    out = jax.block_until_ready(out)
    assert out.shape == (N, 2), out.shape

    ref = reference_forward(x, conv_params, fc_params)
    err = float(jnp.max(jnp.abs(out - ref)))
    # bf16 activations/weights -> compare against the f32 reference with a bf16 tolerance
    tol = 3e-2 * (1.0 + float(jnp.max(jnp.abs(ref))))
    assert err < tol, f"max abs diff vs reference: {err} (tol {tol})"

    print("KERNEL_OK")
</pallas_src>

<mosaic_0001>
module attributes {stable_mosaic.version = 11 : i64} {
  func.func @kernel(%arg0: i32, %arg1: memref<1x8x450xbf16, #tpu.memory_space<vmem>>, %arg2: memref<4x72xbf16, #tpu.memory_space<vmem>>, %arg3: memref<4x1xf32, #tpu.memory_space<vmem>>, %arg4: memref<1x4x384xbf16, #tpu.memory_space<vmem>>) attributes {dimension_semantics = [#tpu.dimension_semantics<parallel>], iteration_bounds = array<i64: 2>, scalar_prefetch = 0 : i64, scratch_operands = 0 : i64, tpu.core_type = #tpu.core_type<tc>, window_params = [{transform_indices = @transform_0, window_bounds = array<i64: 1, 8, 450>}, {pipeline_mode = #tpu.pipeline_mode<synchronous>, transform_indices = @transform_1, window_bounds = array<i64: 4, 72>}, {pipeline_mode = #tpu.pipeline_mode<synchronous>, transform_indices = @transform_2, window_bounds = array<i64: 4, 1>}, {transform_indices = @transform_3, window_bounds = array<i64: 1, 4, 384>}]} {
    %c0 = arith.constant 0 : index
    %c0_0 = arith.constant 0 : index
    %c0_1 = arith.constant 0 : index
    %0 = vector.load %arg1[%c0, %c0_0, %c0_1] : memref<1x8x450xbf16, #tpu.memory_space<vmem>>, vector<1x8x404xbf16>
    %1 = vector.shape_cast %0 : vector<1x8x404xbf16> to vector<8x404xbf16>
    %c0_2 = arith.constant 0 : index
    %c0_3 = arith.constant 0 : index
    %c1 = arith.constant 1 : index
    %2 = vector.load %arg1[%c0_2, %c0_3, %c1] : memref<1x8x450xbf16, #tpu.memory_space<vmem>>, vector<1x8x404xbf16>
    %3 = vector.shape_cast %2 : vector<1x8x404xbf16> to vector<8x404xbf16>
    %c0_4 = arith.constant 0 : index
    %c0_5 = arith.constant 0 : index
    %c2 = arith.constant 2 : index
    %4 = vector.load %arg1[%c0_4, %c0_5, %c2] : memref<1x8x450xbf16, #tpu.memory_space<vmem>>, vector<1x8x404xbf16>
    %5 = vector.shape_cast %4 : vector<1x8x404xbf16> to vector<8x404xbf16>
    %c0_6 = arith.constant 0 : index
    %c0_7 = arith.constant 0 : index
    %c18 = arith.constant 18 : index
    %6 = vector.load %arg1[%c0_6, %c0_7, %c18] : memref<1x8x450xbf16, #tpu.memory_space<vmem>>, vector<1x8x404xbf16>
    %7 = vector.shape_cast %6 : vector<1x8x404xbf16> to vector<8x404xbf16>
    %c0_8 = arith.constant 0 : index
    %c0_9 = arith.constant 0 : index
    %c19 = arith.constant 19 : index
    %8 = vector.load %arg1[%c0_8, %c0_9, %c19] : memref<1x8x450xbf16, #tpu.memory_space<vmem>>, vector<1x8x404xbf16>
    %9 = vector.shape_cast %8 : vector<1x8x404xbf16> to vector<8x404xbf16>
    %c0_10 = arith.constant 0 : index
    %c0_11 = arith.constant 0 : index
    %c20 = arith.constant 20 : index
    %10 = vector.load %arg1[%c0_10, %c0_11, %c20] : memref<1x8x450xbf16, #tpu.memory_space<vmem>>, vector<1x8x404xbf16>
    %11 = vector.shape_cast %10 : vector<1x8x404xbf16> to vector<8x404xbf16>
    %c0_12 = arith.constant 0 : index
    %c0_13 = arith.constant 0 : index
    %c36 = arith.constant 36 : index
    %12 = vector.load %arg1[%c0_12, %c0_13, %c36] : memref<1x8x450xbf16, #tpu.memory_space<vmem>>, vector<1x8x404xbf16>
    %13 = vector.shape_cast %12 : vector<1x8x404xbf16> to vector<8x404xbf16>
    %c0_14 = arith.constant 0 : index
    %c0_15 = arith.constant 0 : index
    %c37 = arith.constant 37 : index
    %14 = vector.load %arg1[%c0_14, %c0_15, %c37] : memref<1x8x450xbf16, #tpu.memory_space<vmem>>, vector<1x8x404xbf16>
    %15 = vector.shape_cast %14 : vector<1x8x404xbf16> to vector<8x404xbf16>
    %c0_16 = arith.constant 0 : index
    %c0_17 = arith.constant 0 : index
    %c38 = arith.constant 38 : index
    %16 = vector.load %arg1[%c0_16, %c0_17, %c38] : memref<1x8x450xbf16, #tpu.memory_space<vmem>>, vector<1x8x404xbf16>
    %17 = vector.shape_cast %16 : vector<1x8x404xbf16> to vector<8x404xbf16>
    %18 = tpu.concatenate %1, %3, %5, %7, %9, %11, %13, %15, %17 in 0 : vector<8x404xbf16>, vector<8x404xbf16>, vector<8x404xbf16>, vector<8x404xbf16>, vector<8x404xbf16>, vector<8x404xbf16>, vector<8x404xbf16>, vector<8x404xbf16>, vector<8x404xbf16> -> vector<72x404xbf16>
    %c0_18 = arith.constant 0 : index
    %c0_19 = arith.constant 0 : index
    %19 = vector.load %arg2[%c0_18, %c0_19] : memref<4x72xbf16, #tpu.memory_space<vmem>>, vector<4x72xbf16>
    %cst = arith.constant dense<0.000000e+00> : vector<4x404xf32>
    %20 = tpu.matmul %19, %18, %cst {dimension_numbers = #tpu.dot_dimension_numbers<[1], [0], [0], [1], [0, 0, 1, 1], [], []>} : vector<4x72xbf16>, vector<72x404xbf16>, vector<4x404xf32> -> vector<4x404xf32>
    %c0_20 = arith.constant 0 : index
    %c0_21 = arith.constant 0 : index
    %21 = vector.load %arg3[%c0_20, %c0_21] : memref<4x1xf32, #tpu.memory_space<vmem>>, vector<4x1xf32>
    %22 = vector.broadcast %21 : vector<4x1xf32> to vector<4x404xf32>
    %23 = arith.addf %20, %22 : vector<4x404xf32>
    %cst_22 = arith.constant 0.000000e+00 : f32
    %24 = vector.broadcast %cst_22 : f32 to vector<4x404xf32>
    %25 = arith.maximumf %23, %24 : vector<4x404xf32>
    %26 = vector.extract_strided_slice %25 {offsets = [0, 0], sizes = [4, 384], strides = [1, 1]} : vector<4x404xf32> to vector<4x384xf32>
    %27 = vector.extract_strided_slice %25 {offsets = [0, 1], sizes = [4, 384], strides = [1, 1]} : vector<4x404xf32> to vector<4x384xf32>
    %28 = arith.maximumf %26, %27 : vector<4x384xf32>
    %29 = vector.extract_strided_slice %25 {offsets = [0, 18], sizes = [4, 384], strides = [1, 1]} : vector<4x404xf32> to vector<4x384xf32>
    %30 = vector.extract_strided_slice %25 {offsets = [0, 19], sizes = [4, 384], strides = [1, 1]} : vector<4x404xf32> to vector<4x384xf32>
    %31 = arith.maximumf %29, %30 : vector<4x384xf32>
    %32 = arith.maximumf %28, %31 : vector<4x384xf32>
    %33 = arith.truncf %32 : vector<4x384xf32> to vector<4x384xbf16>
    %c0_23 = arith.constant 0 : index
    %c0_24 = arith.constant 0 : index
    %c0_25 = arith.constant 0 : index
    %34 = vector.load %arg4[%c0_23, %c0_24, %c0_25] : memref<1x4x384xbf16, #tpu.memory_space<vmem>>, vector<1x4x384xbf16>
    %35 = vector.shape_cast %34 : vector<1x4x384xbf16> to vector<4x384xbf16>
    %36 = vector.shape_cast %33 : vector<4x384xbf16> to vector<1x4x384xbf16>
    tpu.vector_store %arg4[%c0_23, %c0_24, %c0_25], %36 {strides = array<i32>} : memref<1x4x384xbf16, #tpu.memory_space<vmem>>, vector<1x4x384xbf16>,
    return
  }
  func.func @transform_0(%arg0: i32) -> (i32, i32, i32) {
    %c0_i32 = arith.constant 0 : i32
    %c0_i32_0 = arith.constant 0 : i32
    %c0_i32_1 = arith.constant 0 : i32
    return %arg0, %c0_i32, %c0_i32_0 : i32, i32, i32
  }
  func.func @transform_1(%arg0: i32) -> (i32, i32) {
    %c0_i32 = arith.constant 0 : i32
    %c0_i32_0 = arith.constant 0 : i32
    %c0_i32_1 = arith.constant 0 : i32
    return %c0_i32, %c0_i32_0 : i32, i32
  }
  func.func @transform_2(%arg0: i32) -> (i32, i32) {
    %c0_i32 = arith.constant 0 : i32
    %c0_i32_0 = arith.constant 0 : i32
    %c0_i32_1 = arith.constant 0 : i32
    return %c0_i32, %c0_i32_0 : i32, i32
  }
  func.func @transform_3(%arg0: i32) -> (i32, i32, i32) {
    %c0_i32 = arith.constant 0 : i32
    %c0_i32_0 = arith.constant 0 : i32
    %c0_i32_1 = arith.constant 0 : i32
    return %arg0, %c0_i32, %c0_i32_0 : i32, i32, i32
  }
}

module attributes {stable_mosaic.version = 11 : i64} {
  func.func @kernel(%arg0: i32, %arg1: memref<1x8x170xbf16, #tpu.memory_space<vmem>>, %arg2: memref<8x72xbf16, #tpu.memory_space<vmem>>, %arg3: memref<8x1xf32, #tpu.memory_space<vmem>>, %arg4: memref<1x8x128xbf16, #tpu.memory_space<vmem>>) attributes {dimension_semantics = [#tpu.dimension_semantics<parallel>], iteration_bounds = array<i64: 2>, scalar_prefetch = 0 : i64, scratch_operands = 0 : i64, tpu.core_type = #tpu.core_type<tc>, window_params = [{transform_indices = @transform_0, window_bounds = array<i64: 1, 8, 170>}, {pipeline_mode = #tpu.pipeline_mode<synchronous>, transform_indices = @transform_1, window_bounds = array<i64: 8, 72>}, {pipeline_mode = #tpu.pipeline_mode<synchronous>, transform_indices = @transform_2, window_bounds = array<i64: 8, 1>}, {transform_indices = @transform_3, window_bounds = array<i64: 1, 8, 128>}]} {
    %c0 = arith.constant 0 : index
    %c0_0 = arith.constant 0 : index
    %c0_1 = arith.constant 0 : index
    %0 = vector.load %arg1[%c0, %c0_0, %c0_1] : memref<1x8x170xbf16, #tpu.memory_space<vmem>>, vector<1x8x140xbf16>
    %1 = vector.shape_cast %0 : vector<1x8x140xbf16> to vector<8x140xbf16>
    %c0_2 = arith.constant 0 : index
    %c0_3 = arith.constant 0 : index
    %c1 = arith.constant 1 : index
    %2 = vector.load %arg1[%c0_2, %c0_3, %c1] : memref<1x8x170xbf16, #tpu.memory_space<vmem>>, vector<1x8x140xbf16>
    %3 = vector.shape_cast %2 : vector<1x8x140xbf16> to vector<8x140xbf16>
    %c0_4 = arith.constant 0 : index
    %c0_5 = arith.constant 0 : index
    %c2 = arith.constant 2 : index
    %4 = vector.load %arg1[%c0_4, %c0_5, %c2] : memref<1x8x170xbf16, #tpu.memory_space<vmem>>, vector<1x8x140xbf16>
    %5 = vector.shape_cast %4 : vector<1x8x140xbf16> to vector<8x140xbf16>
    %c0_6 = arith.constant 0 : index
    %c0_7 = arith.constant 0 : index
    %c10 = arith.constant 10 : index
    %6 = vector.load %arg1[%c0_6, %c0_7, %c10] : memref<1x8x170xbf16, #tpu.memory_space<vmem>>, vector<1x8x140xbf16>
    %7 = vector.shape_cast %6 : vector<1x8x140xbf16> to vector<8x140xbf16>
    %c0_8 = arith.constant 0 : index
    %c0_9 = arith.constant 0 : index
    %c11 = arith.constant 11 : index
    %8 = vector.load %arg1[%c0_8, %c0_9, %c11] : memref<1x8x170xbf16, #tpu.memory_space<vmem>>, vector<1x8x140xbf16>
    %9 = vector.shape_cast %8 : vector<1x8x140xbf16> to vector<8x140xbf16>
    %c0_10 = arith.constant 0 : index
    %c0_11 = arith.constant 0 : index
    %c12 = arith.constant 12 : index
    %10 = vector.load %arg1[%c0_10, %c0_11, %c12] : memref<1x8x170xbf16, #tpu.memory_space<vmem>>, vector<1x8x140xbf16>
    %11 = vector.shape_cast %10 : vector<1x8x140xbf16> to vector<8x140xbf16>
    %c0_12 = arith.constant 0 : index
    %c0_13 = arith.constant 0 : index
    %c20 = arith.constant 20 : index
    %12 = vector.load %arg1[%c0_12, %c0_13, %c20] : memref<1x8x170xbf16, #tpu.memory_space<vmem>>, vector<1x8x140xbf16>
    %13 = vector.shape_cast %12 : vector<1x8x140xbf16> to vector<8x140xbf16>
    %c0_14 = arith.constant 0 : index
    %c0_15 = arith.constant 0 : index
    %c21 = arith.constant 21 : index
    %14 = vector.load %arg1[%c0_14, %c0_15, %c21] : memref<1x8x170xbf16, #tpu.memory_space<vmem>>, vector<1x8x140xbf16>
    %15 = vector.shape_cast %14 : vector<1x8x140xbf16> to vector<8x140xbf16>
    %c0_16 = arith.constant 0 : index
    %c0_17 = arith.constant 0 : index
    %c22 = arith.constant 22 : index
    %16 = vector.load %arg1[%c0_16, %c0_17, %c22] : memref<1x8x170xbf16, #tpu.memory_space<vmem>>, vector<1x8x140xbf16>
    %17 = vector.shape_cast %16 : vector<1x8x140xbf16> to vector<8x140xbf16>
    %18 = tpu.concatenate %1, %3, %5, %7, %9, %11, %13, %15, %17 in 0 : vector<8x140xbf16>, vector<8x140xbf16>, vector<8x140xbf16>, vector<8x140xbf16>, vector<8x140xbf16>, vector<8x140xbf16>, vector<8x140xbf16>, vector<8x140xbf16>, vector<8x140xbf16> -> vector<72x140xbf16>
    %c0_18 = arith.constant 0 : index
    %c0_19 = arith.constant 0 : index
    %19 = vector.load %arg2[%c0_18, %c0_19] : memref<8x72xbf16, #tpu.memory_space<vmem>>, vector<8x72xbf16>
    %cst = arith.constant dense<0.000000e+00> : vector<8x140xf32>
    %20 = tpu.matmul %19, %18, %cst {dimension_numbers = #tpu.dot_dimension_numbers<[1], [0], [0], [1], [0, 0, 1, 1], [], []>} : vector<8x72xbf16>, vector<72x140xbf16>, vector<8x140xf32> -> vector<8x140xf32>
    %c0_20 = arith.constant 0 : index
    %c0_21 = arith.constant 0 : index
    %21 = vector.load %arg3[%c0_20, %c0_21] : memref<8x1xf32, #tpu.memory_space<vmem>>, vector<8x1xf32>
    %22 = vector.broadcast %21 : vector<8x1xf32> to vector<8x140xf32>
    %23 = arith.addf %20, %22 : vector<8x140xf32>
    %cst_22 = arith.constant 0.000000e+00 : f32
    %24 = vector.broadcast %cst_22 : f32 to vector<8x140xf32>
    %25 = arith.maximumf %23, %24 : vector<8x140xf32>
    %26 = vector.extract_strided_slice %25 {offsets = [0, 0], sizes = [8, 128], strides = [1, 1]} : vector<8x140xf32> to vector<8x128xf32>
    %27 = vector.extract_strided_slice %25 {offsets = [0, 1], sizes = [8, 128], strides = [1, 1]} : vector<8x140xf32> to vector<8x128xf32>
    %28 = arith.maximumf %26, %27 : vector<8x128xf32>
    %29 = vector.extract_strided_slice %25 {offsets = [0, 10], sizes = [8, 128], strides = [1, 1]} : vector<8x140xf32> to vector<8x128xf32>
    %30 = vector.extract_strided_slice %25 {offsets = [0, 11], sizes = [8, 128], strides = [1, 1]} : vector<8x140xf32> to vector<8x128xf32>
    %31 = arith.maximumf %29, %30 : vector<8x128xf32>
    %32 = arith.maximumf %28, %31 : vector<8x128xf32>
    %33 = arith.truncf %32 : vector<8x128xf32> to vector<8x128xbf16>
    %c0_23 = arith.constant 0 : index
    %c0_24 = arith.constant 0 : index
    %c0_25 = arith.constant 0 : index
    %34 = vector.load %arg4[%c0_23, %c0_24, %c0_25] : memref<1x8x128xbf16, #tpu.memory_space<vmem>>, vector<1x8x128xbf16>
    %35 = vector.shape_cast %34 : vector<1x8x128xbf16> to vector<8x128xbf16>
    %36 = vector.shape_cast %33 : vector<8x128xbf16> to vector<1x8x128xbf16>
    tpu.vector_store %arg4[%c0_23, %c0_24, %c0_25], %36 {strides = array<i32>} : memref<1x8x128xbf16, #tpu.memory_space<vmem>>, vector<1x8x128xbf16>,
    return
  }
  func.func @transform_0(%arg0: i32) -> (i32, i32, i32) {
    %c0_i32 = arith.constant 0 : i32
    %c0_i32_0 = arith.constant 0 : i32
    %c0_i32_1 = arith.constant 0 : i32
    return %arg0, %c0_i32, %c0_i32_0 : i32, i32, i32
  }
  func.func @transform_1(%arg0: i32) -> (i32, i32) {
    %c0_i32 = arith.constant 0 : i32
    %c0_i32_0 = arith.constant 0 : i32
    %c0_i32_1 = arith.constant 0 : i32
    return %c0_i32, %c0_i32_0 : i32, i32
  }
  func.func @transform_2(%arg0: i32) -> (i32, i32) {
    %c0_i32 = arith.constant 0 : i32
    %c0_i32_0 = arith.constant 0 : i32
    %c0_i32_1 = arith.constant 0 : i32
    return %c0_i32, %c0_i32_0 : i32, i32
  }
  func.func @transform_3(%arg0: i32) -> (i32, i32, i32) {
    %c0_i32 = arith.constant 0 : i32
    %c0_i32_0 = arith.constant 0 : i32
    %c0_i32_1 = arith.constant 0 : i32
    return %arg0, %c0_i32, %c0_i32_0 : i32, i32, i32
  }
}

module attributes {stable_mosaic.version = 11 : i64} {
  func.func @mlp_kernel(%arg0: memref<2x128xbf16, #tpu.memory_space<vmem>>, %arg1: memref<128x256xbf16, #tpu.memory_space<vmem>>, %arg2: memref<1x256xf32, #tpu.memory_space<vmem>>, %arg3: memref<256x128xbf16, #tpu.memory_space<vmem>>, %arg4: memref<1x128xf32, #tpu.memory_space<vmem>>, %arg5: memref<128x128xbf16, #tpu.memory_space<vmem>>, %arg6: memref<1x128xf32, #tpu.memory_space<vmem>>, %arg7: memref<2x128xf32, #tpu.memory_space<vmem>>) attributes {dimension_semantics = [], scalar_prefetch = 0 : i64, scratch_operands = 0 : i64, tpu.core_type = #tpu.core_type<tc>} {
    %c0 = arith.constant 0 : index
    %c0_0 = arith.constant 0 : index
    %0 = vector.load %arg0[%c0, %c0_0] : memref<2x128xbf16, #tpu.memory_space<vmem>>, vector<2x128xbf16>
    %c0_1 = arith.constant 0 : index
    %c0_2 = arith.constant 0 : index
    %1 = vector.load %arg1[%c0_1, %c0_2] : memref<128x256xbf16, #tpu.memory_space<vmem>>, vector<128x256xbf16>
    %cst = arith.constant dense<0.000000e+00> : vector<2x256xf32>
    %2 = tpu.matmul %0, %1, %cst {dimension_numbers = #tpu.dot_dimension_numbers<[1], [0], [0], [1], [0, 0, 1, 1], [], []>} : vector<2x128xbf16>, vector<128x256xbf16>, vector<2x256xf32> -> vector<2x256xf32>
    %c0_3 = arith.constant 0 : index
    %c0_4 = arith.constant 0 : index
    %3 = vector.load %arg2[%c0_3, %c0_4] : memref<1x256xf32, #tpu.memory_space<vmem>>, vector<1x256xf32>
    %4 = vector.broadcast %3 : vector<1x256xf32> to vector<2x256xf32>
    %5 = arith.addf %2, %4 : vector<2x256xf32>
    %cst_5 = arith.constant 0.000000e+00 : f32
    %6 = vector.broadcast %cst_5 : f32 to vector<2x256xf32>
    %7 = arith.maximumf %5, %6 : vector<2x256xf32>
    %8 = arith.truncf %7 : vector<2x256xf32> to vector<2x256xbf16>
    %c0_6 = arith.constant 0 : index
    %c0_7 = arith.constant 0 : index
    %9 = vector.load %arg3[%c0_6, %c0_7] : memref<256x128xbf16, #tpu.memory_space<vmem>>, vector<256x128xbf16>
    %cst_8 = arith.constant dense<0.000000e+00> : vector<2x128xf32>
    %10 = tpu.matmul %8, %9, %cst_8 {dimension_numbers = #tpu.dot_dimension_numbers<[1], [0], [0], [1], [0, 0, 1, 1], [], []>} : vector<2x256xbf16>, vector<256x128xbf16>, vector<2x128xf32> -> vector<2x128xf32>
    %c0_9 = arith.constant 0 : index
    %c0_10 = arith.constant 0 : index
    %11 = vector.load %arg4[%c0_9, %c0_10] : memref<1x128xf32, #tpu.memory_space<vmem>>, vector<1x128xf32>
    %12 = vector.broadcast %11 : vector<1x128xf32> to vector<2x128xf32>
    %13 = arith.addf %10, %12 : vector<2x128xf32>
    %cst_11 = arith.constant 0.000000e+00 : f32
    %14 = vector.broadcast %cst_11 : f32 to vector<2x128xf32>
    %15 = arith.maximumf %13, %14 : vector<2x128xf32>
    %16 = arith.truncf %15 : vector<2x128xf32> to vector<2x128xbf16>
    %c0_12 = arith.constant 0 : index
    %c0_13 = arith.constant 0 : index
    %17 = vector.load %arg5[%c0_12, %c0_13] : memref<128x128xbf16, #tpu.memory_space<vmem>>, vector<128x128xbf16>
    %cst_14 = arith.constant dense<0.000000e+00> : vector<2x128xf32>
    %18 = tpu.matmul %16, %17, %cst_14 {dimension_numbers = #tpu.dot_dimension_numbers<[1], [0], [0], [1], [0, 0, 1, 1], [], []>} : vector<2x128xbf16>, vector<128x128xbf16>, vector<2x128xf32> -> vector<2x128xf32>
    %c0_15 = arith.constant 0 : index
    %c0_16 = arith.constant 0 : index
    %19 = vector.load %arg6[%c0_15, %c0_16] : memref<1x128xf32, #tpu.memory_space<vmem>>, vector<1x128xf32>
    %20 = vector.broadcast %19 : vector<1x128xf32> to vector<2x128xf32>
    %21 = arith.addf %18, %20 : vector<2x128xf32>
    %c0_17 = arith.constant 0 : index
    %c0_18 = arith.constant 0 : index
    %22 = vector.load %arg7[%c0_17, %c0_18] : memref<2x128xf32, #tpu.memory_space<vmem>>, vector<2x128xf32>
    tpu.vector_store %arg7[%c0_17, %c0_18], %21 {strides = array<i32>} : memref<2x128xf32, #tpu.memory_space<vmem>>, vector<2x128xf32>,
    return
  }
}

</mosaic_0001>

<bundles_post_ra>
// kernel: custom_cnn_forward.3
= control target key start
LH: loop header
LB: loop body
LE: loop exit
PB: predicated region body
PF: predicated region fallthrough
CT: control target
= control target key end

     0   :  { %s635_s12 = smov 0   ;;  %s781_s0 = inlined_call_operand.vmem [shape: bf16[2,8,450], index: 0, kind: input, shape index: {}]   ;;  %s782_s1 = inlined_call_operand.vmem [shape: bf16[4,72], index: 1, kind: input, shape index: {}]   ;;  %s783_s2 = inlined_call_operand.vmem [shape: f32[4,1], index: 2, kind: input, shape index: {}]   ;;  %s784_s3 = inlined_call_operand.vmem [shape: bf16[2,4,384], index: 3, kind: output, shape index: {}]  }
   0x1 LB: > { %s543_s13 = sadd.s32 4294967295, %s604_s12   ;;  %p547_p0 = scmp.ge.s32.totalorder %s604_s12, 1  ;;  %s604_s12 = sphi %s635_s12, %s13_s12  }
   0x2   : > { %p137_p1 = scmp.lt.s32.totalorder %s604_s12, 3 }
   0x4   : > { %p138_p2 = pnand %p547_p0, %p137_p1 }
   0x5   : > { %p161_p3 = scmp.lt.s32.totalorder (!%p138_p2), %s543_s13, 1  ;;  %s606_s18 = smov (!%p138_p2), 91  }
   0x6   : > { %141 = sbr.rel (%p138_p2) target bundleno = 591 (0x24f), region = 32  ;;  %s607_s19 = smov (!%p138_p2), 92  }
   0x7   : > { %s608_s20 = smov (!%p138_p2), 90   ;;  %s609_s21 = smov (!%p138_p2), 109  }
   0x8   : > { %s610_s22 = smov (!%p138_p2), 108   ;;  %s611_s23 = smov (!%p138_p2), 126  }
   0x9   : > { %s612_s24 = smov (!%p138_p2), 110   ;;  %s613_s25 = smov (!%p138_p2), 127  }
   0xb   : > { %s786_s13 = smov (!%p161_p3, %s543_s13), 1  ;;  %vm280_vm0 = vcmask 1043456   ;;  %vm276_vm1 = vcmask 736256   ;;  %vm264_vm2 = vcmask 744448   ;;  %vm252_vm3 = vcmask 752640  }
   0xc   : > { %s557_s14 = sshll.u32 %s786_s13, 4  ;;  %vm240_vm4 = vcmask 883712   ;;  %vm228_vm5 = vcmask 891904   ;;  %vm204_vm6 = vcmask 1031168   ;;  %vm216_vm7 = vcmask 900096   ;;  %s558_s30 = smul.u32 6, %s786_s13 }
   0xd   : > { %s165_s17 = scalar_lea.vmem %s781_s0, %s557_s14  ;;  %v346_v57 = vld [vmem:[%s783_s2] sm:$0xf]  ;;  %v614_v59 = vmov 0   ;;  %vm192_vm8 = vcmask 1039360   ;;  %vm352_vm9 = vcmask 588800   ;;  %vm477_vm10 = vcmask 1041408  }
   0xe   : > { %v173_v0 = vld [vmem:[%s165_s17 + $0x8] sm:$0xff]  ;;  %v172_v5 = vld [vmem:[%s165_s17] sm:$0xff]  ;;  %576 = vset.pattern.permute.xlu2 %v614_v59  ;;  %597 = vset.pattern.permute.xlu0 %v614_v59  ;;  %vm481_vm11 = vcmask 1045508   ;;  %s170_s6 = scalar_lea.vmem %s784_s3, %s558_s30 }
   0xf   : > { %v178_v1 = vunpack.c.l.b16 %v173_v0  ;;  %v179_v3 = vunpack.c.h.b16 %v173_v0  ;;  %v177_v6 = vunpack.c.h.b16 %v172_v5  ;;  %v176_v7 = vunpack.c.l.b16 %v172_v5 }
  0x11   : > { %v649_v2 = vpack.c.b16 %v178_v1, %v178_v1  ;;  %v655_v4 = vpack.c.b16 %v179_v3, %v179_v3  ;;  %v661_v8 = vpack.c.b16 %v177_v6, %v177_v6  ;;  %v663_v9 = vpack.c.b16 %v176_v7, %v176_v7 }
  0x13   : > { %260 = vrot.lane.b32.xlu2 %v649_v2, %s606_s18  ;;  %248 = vrot.lane.b32.xlu1 %v649_v2, %s607_s19 }
  0x14   : > { %272 = vrot.lane.b32.xlu0 %v649_v2, %s608_s20 }
  0x1b   : > { %262 = vrot.lane.b32.xlu2 %v655_v4, %s606_s18  ;;  %250 = vrot.lane.b32.xlu1 %v655_v4, %s607_s19 }
  0x1c   : > { %274 = vrot.lane.b32.xlu0 %v655_v4, %s608_s20 }
  0x23   : > { %224 = vrot.lane.b32.xlu2 %v649_v2, %s609_s21  ;;  %270 = vrot.lane.b32.xlu1 %v661_v8, %s608_s20 }
  0x24   : > { %268 = vrot.lane.b32.xlu0 %v663_v9, %s608_s20 }
  0x2b   : > { %238 = vrot.lane.b32.xlu2 %v655_v4, %s610_s22  ;;  %236 = vrot.lane.b32.xlu1 %v649_v2, %s610_s22 }
  0x2c   : > { %226 = vrot.lane.b32.xlu0 %v655_v4, %s609_s21 }
  0x33   : > { %246 = vrot.lane.b32.xlu1 %v661_v8, %s607_s19  ;;  %256 = vrot.lane.b32.xlu2 %v663_v9, %s606_s18 }
  0x34   : > { %244 = vrot.lane.b32.xlu0 %v663_v9, %s607_s19 }
  0x3b   : > { %200 = vrot.lane.b32.xlu1 %v649_v2, %s611_s23  ;;  %202 = vrot.lane.b32.xlu2 %v655_v4, %s611_s23 }
  0x3c   : > { %258 = vrot.lane.b32.xlu0 %v661_v8, %s606_s18 }
  0x43   : > { %214 = vrot.lane.b32.xlu1 %v655_v4, %s612_s24  ;;  %220 = vrot.lane.b32.xlu2 %v663_v9, %s609_s21 }
  0x44   : > { %212 = vrot.lane.b32.xlu0 %v649_v2, %s612_s24 }
  0x4b   : > { %232 = vrot.lane.b32.xlu1 %v663_v9, %s610_s22  ;;  %234 = vrot.lane.b32.xlu2 %v661_v8, %s610_s22 }
  0x4c   : > { %222 = vrot.lane.b32.xlu0 %v661_v8, %s609_s21 }
  0x53   : > { %190 = vrot.lane.b32.xlu1 %v655_v4, %s613_s25  ;;  %196 = vrot.lane.b32.xlu2 %v663_v9, %s611_s23 }
  0x54   : > { %188 = vrot.lane.b32.xlu0 %v649_v2, %s613_s25 }
  0x5b   : > { %208 = vrot.lane.b32.xlu1 %v663_v9, %s612_s24  ;;  %210 = vrot.lane.b32.xlu2 %v661_v8, %s612_s24 }
  0x5c   : > { %198 = vrot.lane.b32.xlu0 %v661_v8, %s611_s23 }
  0x63   : > { %186 = vrot.lane.b32.xlu1 %v661_v8, %s613_s25  ;;  %349 = vperm.xlu2 %576, %v346_v57  }
  0x64   : > { %184 = vrot.lane.b32.xlu0 %v663_v9, %s613_s25 }
  0x6d   : > { %v261_v10 = vpop.permute.xlu2 %260 }
  0x75   : > { %v263_v11 = vpop.permute.xlu2 %262 }
  0x76   : > { %v267_v21 = vsel %vm264_vm2, %v261_v10, %v263_v11 }
  0x7d   : > { %v701_v13 = vpop.permute.xlu2 %224 }
  0x85   : > { %v249_v12 = vpop.permute.xlu1 %248  ;;  %v239_v19 = vpop.permute.xlu2 %238 }
  0x86   : > { %v273_v14 = vpop.permute.xlu0 %272 }
  0x8d   : > { %v251_v15 = vpop.permute.xlu1 %250  ;;  %v257_v31 = vpop.permute.xlu2 %256 }
  0x8e   : > { %v275_v16 = vpop.permute.xlu0 %274  ;;  %v255_v22 = vsel %vm252_vm3, %v249_v12, %v251_v15  ;;  %v343_v23 = vsel %vm280_vm0, %v251_v15, %v263_v11 }
  0x8f   : > { %v366_v17 = vsel %vm280_vm0, %v275_v16, 0  ;;  %v279_v18 = vsel %vm276_vm1, %v273_v14, %v275_v16  ;;  %v339_v24 = vsel %vm280_vm0, %v255_v22, %v267_v21 }
  0x90   : > { %410 = vmatpush.bf16.msra.mxu3 %v366_v17  ;;  %v363_v20 = vsel %vm280_vm0, %v279_v18, 0 }
  0x91   : > { %397 = vmatpush.bf16.msra.mxu2 %v363_v20 }
  0x94   : > { %411 = vmatpush.bf16.msra.mxu3 %v343_v23 }
  0x95   : > { %398 = vmatpush.bf16.msra.mxu2 %v339_v24  ;;  %v271_v25 = vpop.permute.xlu1 %270  ;;  %v203_v38 = vpop.permute.xlu2 %202 }
  0x96   : > { %v269_v26 = vpop.permute.xlu0 %268  ;;  %v278_v27 = vsel %vm276_vm1, %v271_v25, %v273_v14 }
  0x97   : > { %v277_v28 = vsel %vm276_vm1, %v269_v26, %v271_v25  ;;  %v360_v29 = vsel %vm280_vm0, %v278_v27, 0 }
  0x98   : > { %v357_v30 = vsel %vm280_vm0, %v277_v28, 0  ;;  %384 = vmatpush.bf16.msra.mxu1 %v360_v29 }
  0x99   : > { %371 = vmatpush.bf16.msra.mxu0 %v357_v30 }
  0x9d   : > { %v237_v32 = vpop.permute.xlu1 %236  ;;  %v221_v42 = vpop.permute.xlu2 %220 }
  0x9e   : > { %v243_v33 = vsel %vm240_vm4, %v237_v32, %v239_v19  ;;  %v227_v34 = vpop.permute.xlu0 %226 }
  0x9f   : > { %v231_v35 = vsel %vm228_vm5, %v701_v13, %v227_v34  ;;  %v327_v36 = vsel %vm280_vm0, %v227_v34, %v239_v19 }
  0xa0   : > { %412 = vmatpush.bf16.msra.mxu3 %v327_v36  ;;  %v323_v37 = vsel %vm280_vm0, %v231_v35, %v243_v33 }
  0xa1   : > { %399 = vmatpush.bf16.msra.mxu2 %v323_v37 }
  0xa5   : > { %v247_v39 = vpop.permute.xlu1 %246  ;;  %v235_v55 = vpop.permute.xlu2 %234 }
  0xa6   : > { %v245_v40 = vpop.permute.xlu0 %244  ;;  %v254_v44 = vsel %vm252_vm3, %v247_v39, %v249_v12  ;;  %v242_v62 = vsel %vm240_vm4, %v235_v55, %v237_v32  ;;  %v345_v12 = vld [vmem:[%s782_s1] sm:$0x3] }
  0xa7   : > { %v253_v45 = vsel %vm252_vm3, %v245_v40, %v247_v39 }
  0xad   : > { %v201_v41 = vpop.permute.xlu1 %200  ;;  %v197_v5 = vpop.permute.xlu2 %196 }
  0xae   : > { %v259_v43 = vpop.permute.xlu0 %258  ;;  %v207_v53 = vsel %vm204_vm6, %v201_v41, %v203_v38 }
  0xaf   : > { %v265_v46 = vsel %vm264_vm2, %v257_v31, %v259_v43  ;;  %v266_v47 = vsel %vm264_vm2, %v259_v43, %v261_v10 }
  0xb0   : > { %v331_v48 = vsel %vm280_vm0, %v253_v45, %v265_v46  ;;  %v335_v49 = vsel %vm280_vm0, %v254_v44, %v266_v47 }
  0xb1   : > { %372 = vmatpush.bf16.msra.mxu0 %v331_v48  ;;  %385 = vmatpush.bf16.msra.mxu1 %v335_v49 }
  0xb5   : > { %v215_v50 = vpop.permute.xlu1 %214  ;;  %v211_v14 = vpop.permute.xlu2 %210 }
  0xb6   : > { %v213_v51 = vpop.permute.xlu0 %212  ;;  %v311_v52 = vsel %vm280_vm0, %v203_v38, %v215_v50 }
  0xb7   : > { %v219_v54 = vsel %vm216_vm7, %v213_v51, %v215_v50  ;;  %413 = vmatpush.bf16.msra.mxu3 %v311_v52  ;;  %v218_v17 = vsel %vm216_vm7, %v211_v14, %v213_v51 }
  0xb8   : > { %v307_v56 = vsel %vm280_vm0, %v207_v53, %v219_v54 }
  0xb9   : > { %400 = vmatpush.bf16.msra.mxu2 %v307_v56 }
  0xbd   : > { %v233_v58 = vpop.permute.xlu1 %232  ;;  %v350_v27 = vpop.permute.xlu2 %349 }
  0xbe   : > { %v241_v60 = vsel %vm240_vm4, %v233_v58, %v235_v55  ;;  %v223_v61 = vpop.permute.xlu0 %222 }
  0xbf   : > { %v229_v63 = vsel %vm228_vm5, %v221_v42, %v223_v61  ;;  %v230_v0 = vsel %vm228_vm5, %v223_v61, %v701_v13 }
  0xc0   : > { %v315_v1 = vsel %vm280_vm0, %v229_v63, %v241_v60  ;;  %v319_v3 = vsel %vm280_vm0, %v230_v0, %v242_v62 }
  0xc1   : > { %373 = vmatpush.bf16.msra.mxu0 %v315_v1  ;;  %386 = vmatpush.bf16.msra.mxu1 %v319_v3 }
  0xc5   : > { %v191_v6 = vpop.permute.xlu1 %190 }
  0xc6   : > { %v189_v7 = vpop.permute.xlu0 %188  ;;  %v295_v10 = vsel %vm280_vm0, %v655_v4, %v191_v6 }
  0xc7   : > { %v195_v11 = vsel %vm192_vm8, %v189_v7, %v191_v6  ;;  %414 = vmatpush.bf16.msra.mxu3 %v295_v10 }
  0xc8   : > { %v291_v13 = vsel %vm280_vm0, %v649_v2, %v195_v11 }
  0xc9   : > { %401 = vmatpush.bf16.msra.mxu2 %v291_v13 }
  0xca   : > { %554 = vmatmul.msk.bf16.vlgmr.msra.gmra.mxu3 %vm352_vm9, %v345_v12 }
  0xcc   : > { %553 = vmatmul.msk.bf16.vlgmr.msra.gmra.mxu2 %vm352_vm9, %v345_v12 }
  0xcd   : > { %v209_v15 = vpop.permute.xlu1 %208 }
  0xce   : > { %v217_v4 = vsel %vm216_vm7, %v209_v15, %v211_v14  ;;  %v199_v16 = vpop.permute.xlu0 %198 }
  0xcf   : > { %v205_v18 = vsel %vm204_vm6, %v197_v5, %v199_v16  ;;  %v206_v19 = vsel %vm204_vm6, %v199_v16, %v201_v41 }
  0xd0   : > { %v303_v20 = vsel %vm280_vm0, %v206_v19, %v218_v17  ;;  %v299_v2 = vsel %vm280_vm0, %v205_v18, %v217_v4 }
  0xd1   : > { %387 = vmatpush.bf16.msra.mxu1 %v303_v20  ;;  %374 = vmatpush.bf16.msra.mxu0 %v299_v2 }
  0xd5   : > { %v187_v21 = vpop.permute.xlu1 %186 }
  0xd6   : > { %v194_v22 = vsel %vm192_vm8, %v187_v21, %v189_v7  ;;  %v185_v23 = vpop.permute.xlu0 %184 }
  0xd7   : > { %v193_v24 = vsel %vm192_vm8, %v185_v23, %v187_v21  ;;  %v287_v25 = vsel %vm280_vm0, %v661_v8, %v194_v22 }
  0xd8   : > { %v283_v26 = vsel %vm280_vm0, %v663_v9, %v193_v24  ;;  %388 = vmatpush.bf16.msra.mxu1 %v287_v25 }
  0xd9   : > { %375 = vmatpush.bf16.msra.mxu0 %v283_v26 }
  0xdb   : > { %552 = vmatmul.msk.bf16.vlgmr.msra.gmra.mxu1 %vm352_vm9, %v345_v12 }
  0xdc   : > { %551 = vmatmul.msk.bf16.vlgmr.msra.gmra.mxu0 %vm352_vm9, %v345_v12 }
 0x14d   : > { %v416_v28 = vpop.f32.mrf.mxu3 }
 0x14e   : > { %v417_v29 = vadd.f32 %v416_v28, %v350_v27 }
 0x14f   : > { %v403_v30 = vpop.f32.mrf.mxu2 }
 0x150   : > { %v404_v31 = vadd.f32 %v403_v30, %v350_v27  ;;  %v423_v32 = vmax.f32 %v417_v29, 0.0 }
 0x152   : > { %v422_v33 = vmax.f32 %v404_v31, 0.0 }
 0x154   : > { %v582_v34 = vpack.i.bf16 %v423_v32, %v422_v33 }
 0x155   : > { %v418_v35 = vpop.f32.mrf.mxu3 }
 0x156   : > { %583 = vrot.lane.b32.xlu1 %v582_v34, %s613_s25 }
 0x157   : > { %v405_v8 = vpop.f32.mrf.mxu2 }
 0x158   : > { %v390_v36 = vpop.f32.mrf.mxu1 }
 0x159   : > { %v377_v9 = vpop.f32.mrf.mxu0  ;;  %v391_v37 = vadd.f32 %v390_v36, %v350_v27 }
 0x15a   : > { %v378_v38 = vadd.f32 %v377_v9, %v350_v27 }
 0x15b   : > { %v421_v39 = vmax.f32 %v391_v37, 0.0 }
 0x15c   : > { %v420_v40 = vmax.f32 %v378_v38, 0.0 }
 0x15e   : > { %v577_v41 = vpack.i.bf16 %v421_v39, %v420_v40 }
 0x160   : > { %578 = vrot.lane.b32.xlu0 %v577_v41, %s613_s25  ;;  %v392_v42 = vpop.f32.mrf.mxu1 }
 0x161   : > { %v379_v43 = vpop.f32.mrf.mxu0 }
 0x1c8   : > { %v584_v44 = vpop.permute.xlu1 %583 }
 0x1c9   : > { %v586_v45 = vunpack.i.h.bf16 %v584_v44  ;;  %v585_v46 = vunpack.i.l.bf16 %v584_v44 }
 0x1cb   : > { %v447_v47 = vmax.f32 %v423_v32, %v586_v45  ;;  %v439_v48 = vsel %vm192_vm8, %v585_v46, %v586_v45 }
 0x1cc   : > { %v445_v49 = vmax.f32 %v422_v33, %v439_v48 }
 0x1ce   : > { %v592_v50 = vpack.i.bf16 %v447_v47, %v445_v49 }
 0x1d0   : > { %593 = vrot.lane.b32.xlu0 %v592_v50, %s612_s24 }
 0x1d2   : > { %v579_v51 = vpop.permute.xlu0 %578 }
 0x1d3   : > { %v581_v52 = vunpack.i.h.bf16 %v579_v51  ;;  %v580_v53 = vunpack.i.l.bf16 %v579_v51 }
 0x1d5   : > { %v438_v54 = vsel %vm192_vm8, %v581_v52, %v585_v46  ;;  %v437_v55 = vsel %vm192_vm8, %v580_v53, %v581_v52 }
 0x1d6   : > { %v443_v56 = vmax.f32 %v420_v40, %v437_v55  ;;  %v444_v57 = vmax.f32 %v421_v39, %v438_v54 }
 0x1d8   : > { %v587_v58 = vpack.i.bf16 %v444_v57, %v443_v56 }
 0x1da   : > { %588 = vrot.lane.b32.xlu2 %v587_v58, %s612_s24 }
 0x234   : > { %v589_v59 = vpop.permute.xlu2 %588 }
 0x235   : > { %v591_v60 = vunpack.i.h.bf16 %v589_v59  ;;  %v590_v61 = vunpack.i.l.bf16 %v589_v59 }
 0x237   : > { %v461_v63 = vsel %vm216_vm7, %v590_v61, %v591_v60 }
 0x238   : > { %v467_v6 = vmax.f32 %v443_v56, %v461_v63 }
 0x242   : > { %v594_v62 = vpop.permute.xlu0 %593 }
 0x243   : > { %v596_v0 = vunpack.i.h.bf16 %v594_v62  ;;  %v595_v1 = vunpack.i.l.bf16 %v594_v62 }
 0x245   : > { %v462_v3 = vsel %vm216_vm7, %v591_v60, %v595_v1  ;;  %v463_v5 = vsel %vm216_vm7, %v595_v1, %v596_v0 }
 0x246   : > { %v468_v7 = vmax.f32 %v444_v57, %v462_v3  ;;  %v469_v10 = vmax.f32 %v445_v49, %v463_v5 }
 0x248   : > { %v470_v11 = vpack.c.bf16 %v468_v7, %v467_v6  ;;  %v471_v12 = vpack.c.bf16 %v469_v10, %v469_v10 }
 0x24a   : > { %v474_v13 = vrot.slane %v470_v11, 2  ;;  %v475_v14 = vrot.slane %v471_v12, 4  ;;  %v476_v15 = vrot.slane %v471_v12, 6 }
 0x24c   : > { %v480_v4 = vsel %vm477_vm10, %v470_v11, %v474_v13  ;;  %v484_v16 = vsel %vm481_vm11, %v475_v14, %v476_v15 }
 0x24d   : > { %v485_v17 = vsel %vm280_vm0, %v480_v4, %v484_v16 }
 0x24e   : > { %487 = vst [vmem:[%s170_s6] sm:$0x3f] %v485_v17 }
 0x24f PF: > { %s13_s12 = sadd.s32 1, %s604_s12  }
 0x250   : > { %p10_p4 = scmp.ge.s32.totalorder %s13_s12, 4  }
 0x252   :  { %12 = sbr.rel (!%p10_p4) target bundleno = 1 (0x1), region = 62 }

// kernel: custom_cnn_forward.4
= control target key start
LH: loop header
LB: loop body
LE: loop exit
PB: predicated region body
PF: predicated region fallthrough
CT: control target
= control target key end

     0   :  { %s458_s12 = smov 0   ;;  %s527_s0 = inlined_call_operand.vmem [shape: bf16[2,8,170], index: 0, kind: input, shape index: {}]   ;;  %s528_s1 = inlined_call_operand.vmem [shape: bf16[8,72], index: 1, kind: input, shape index: {}]   ;;  %s529_s2 = inlined_call_operand.vmem [shape: f32[8,1], index: 2, kind: input, shape index: {}]   ;;  %s530_s3 = inlined_call_operand.vmem [shape: bf16[2,8,128], index: 3, kind: output, shape index: {}]  }
   0x1 LB: > { %s379_s13 = sadd.s32 4294967295, %s427_s12   ;;  %p383_p0 = scmp.ge.s32.totalorder %s427_s12, 1  ;;  %s427_s12 = sphi %s458_s12, %s13_s12  }
   0x2   : > { %p137_p1 = scmp.lt.s32.totalorder %s427_s12, 3 }
   0x4   : > { %p138_p2 = pnand %p383_p0, %p137_p1 }
   0x5   : > { %p160_p3 = scmp.lt.s32.totalorder (!%p138_p2), %s379_s13, 1  ;;  %s429_s18 = smov (!%p138_p2), 108  }
   0x6   : > { %141 = sbr.rel (%p138_p2) target bundleno = 532 (0x214), region = 32  ;;  %s430_s19 = smov (!%p138_p2), 106  }
   0x7   : > { %s431_s20 = smov (!%p138_p2), 107   ;;  %s432_s21 = smov (!%p138_p2), 117  }
   0x8   : > { %s433_s22 = smov (!%p138_p2), 116   ;;  %s434_s23 = smov (!%p138_p2), 126  }
   0x9   : > { %s435_s24 = smov (!%p138_p2), 118   ;;  %s436_s25 = smov (!%p138_p2), 127  }
   0xb   : > { %s532_s13 = smov (!%p160_p3, %s379_s13), 1  ;;  %vm224_vm0 = vcmask 1043456   ;;  %vm222_vm1 = vcmask 867328   ;;  %vm216_vm2 = vcmask 875520   ;;  %vm210_vm3 = vcmask 883712   ;;  %v258_v18 = vld [vmem:[%s529_s2] sm:$0xff] }
   0xc   : > { %s391_s14 = sshll.u32 %s532_s13, 3  ;;  %v437_v19 = vmov 0   ;;  %vm198_vm4 = vcmask 957440   ;;  %vm204_vm5 = vcmask 949248   ;;  %vm186_vm6 = vcmask 1031168   ;;  %s386_s30 = sshll.u32 %s532_s13, 2 }
   0xd   : > { %s164_s17 = scalar_lea.vmem %s527_s0, %s391_s14  ;;  %409 = vset.pattern.permute.xlu1 %v437_v19  ;;  %420 = vset.pattern.permute.xlu0 %v437_v19  ;;  %vm192_vm7 = vcmask 965632   ;;  %vm180_vm8 = vcmask 1039360   ;;  %v257_v41 = vld [vmem:[%s528_s1] sm:$0xf]  ;;  %vm264_vm9 = vcmask 588800   ;;  %s168_s6 = scalar_lea.vmem %s530_s3, %s386_s30 }
   0xe   : > { %v170_v0 = vld [vmem:[%s164_s17] sm:$0xff] }
   0xf   : > { %v172_v1 = vunpack.c.l.b16 %v170_v0  ;;  %v173_v3 = vunpack.c.h.b16 %v170_v0 }
  0x11   : > { %v472_v2 = vpack.c.b16 %v172_v1, %v172_v1  ;;  %v477_v4 = vpack.c.b16 %v173_v3, %v173_v3 }
  0x13   : > { %206 = vrot.lane.b32.xlu1 %v472_v2, %s429_s18  ;;  %218 = vrot.lane.b32.xlu0 %v472_v2, %s430_s19 }
  0x14   : > { %212 = vrot.lane.b32.xlu2 %v472_v2, %s431_s20 }
  0x1b   : > { %208 = vrot.lane.b32.xlu1 %v477_v4, %s429_s18  ;;  %220 = vrot.lane.b32.xlu0 %v477_v4, %s430_s19 }
  0x1c   : > { %214 = vrot.lane.b32.xlu2 %v477_v4, %s431_s20 }
  0x23   : > { %196 = vrot.lane.b32.xlu1 %v477_v4, %s432_s21  ;;  %194 = vrot.lane.b32.xlu0 %v472_v2, %s432_s21 }
  0x24   : > { %200 = vrot.lane.b32.xlu2 %v472_v2, %s433_s22 }
  0x2b   : > { %182 = vrot.lane.b32.xlu1 %v472_v2, %s434_s23  ;;  %202 = vrot.lane.b32.xlu0 %v477_v4, %s433_s22 }
  0x2c   : > { %184 = vrot.lane.b32.xlu2 %v477_v4, %s434_s23 }
  0x33   : > { %190 = vrot.lane.b32.xlu1 %v477_v4, %s435_s24  ;;  %188 = vrot.lane.b32.xlu0 %v472_v2, %s435_s24 }
  0x34   : > { %176 = vrot.lane.b32.xlu2 %v472_v2, %s436_s25 }
  0x3b   : > { %178 = vrot.lane.b32.xlu0 %v477_v4, %s436_s25  ;;  %261 = vperm.xlu1 %409, %v258_v18  }
  0x6e   : > { %v213_v5 = vpop.permute.xlu2 %212 }
  0x76   : > { %v215_v8 = vpop.permute.xlu2 %214 }
  0x77   : > { %v217_v14 = vsel %vm216_vm2, %v213_v5, %v215_v8 }
  0x7e   : > { %v201_v22 = vpop.permute.xlu2 %200 }
  0x85   : > { %v207_v6 = vpop.permute.xlu1 %206  ;;  %v219_v7 = vpop.permute.xlu0 %218 }
  0x86   : > { %v185_v29 = vpop.permute.xlu2 %184 }
  0x8d   : > { %v209_v9 = vpop.permute.xlu1 %208  ;;  %v221_v10 = vpop.permute.xlu0 %220 }
  0x8e   : > { %v272_v11 = vsel %vm224_vm0, %v221_v10, 0  ;;  %v223_v12 = vsel %vm222_vm1, %v219_v7, %v221_v10  ;;  %v211_v15 = vsel %vm210_vm3, %v207_v6, %v209_v9  ;;  %v255_v16 = vsel %vm224_vm0, %v209_v9, %v215_v8  ;;  %v177_v36 = vpop.permute.xlu2 %176 }
  0x8f   : > { %290 = vmatpush.bf16.msra.mxu1 %v272_v11  ;;  %v269_v13 = vsel %vm224_vm0, %v223_v12, 0  ;;  %v251_v17 = vsel %vm224_vm0, %v211_v15, %v217_v14 }
  0x90   : > { %277 = vmatpush.bf16.msra.mxu0 %v269_v13 }
  0x93   : > { %291 = vmatpush.bf16.msra.mxu1 %v255_v16 }
  0x94   : > { %278 = vmatpush.bf16.msra.mxu0 %v251_v17 }
  0x95   : > { %v197_v20 = vpop.permute.xlu1 %196  ;;  %v195_v21 = vpop.permute.xlu0 %194 }
  0x96   : > { %v199_v25 = vsel %vm198_vm4, %v195_v21, %v197_v20 }
  0x9d   : > { %v183_v23 = vpop.permute.xlu1 %182  ;;  %v203_v24 = vpop.permute.xlu0 %202 }
  0x9e   : > { %v205_v26 = vsel %vm204_vm5, %v201_v22, %v203_v24  ;;  %v247_v27 = vsel %vm224_vm0, %v197_v20, %v203_v24  ;;  %v187_v32 = vsel %vm186_vm6, %v183_v23, %v185_v29 }
  0x9f   : > { %292 = vmatpush.bf16.msra.mxu1 %v247_v27  ;;  %v243_v28 = vsel %vm224_vm0, %v199_v25, %v205_v26 }
  0xa0   : > { %279 = vmatpush.bf16.msra.mxu0 %v243_v28 }
  0xa5   : > { %v191_v30 = vpop.permute.xlu1 %190  ;;  %v189_v31 = vpop.permute.xlu0 %188 }
  0xa6   : > { %v193_v33 = vsel %vm192_vm7, %v189_v31, %v191_v30  ;;  %v239_v34 = vsel %vm224_vm0, %v185_v29, %v191_v30 }
  0xa7   : > { %293 = vmatpush.bf16.msra.mxu1 %v239_v34  ;;  %v235_v35 = vsel %vm224_vm0, %v187_v32, %v193_v33 }
  0xa8   : > { %280 = vmatpush.bf16.msra.mxu0 %v235_v35 }
  0xad   : > { %v179_v37 = vpop.permute.xlu0 %178  ;;  %v262_v42 = vpop.permute.xlu1 %261 }
  0xae   : > { %v181_v38 = vsel %vm180_vm8, %v177_v36, %v179_v37  ;;  %v231_v39 = vsel %vm224_vm0, %v477_v4, %v179_v37 }
  0xaf   : > { %294 = vmatpush.bf16.msra.mxu1 %v231_v39  ;;  %v227_v40 = vsel %vm224_vm0, %v472_v2, %v181_v38 }
  0xb0   : > { %281 = vmatpush.bf16.msra.mxu0 %v227_v40 }
  0xb2   : > { %388 = vmatmul.msk.bf16.vlgmr.msra.gmra.mxu1 %vm264_vm9, %v257_v41 }
  0xb3   : > { %387 = vmatmul.msk.bf16.vlgmr.msra.gmra.mxu0 %vm264_vm9, %v257_v41 }
 0x12f   : > { %v296_v43 = vpop.f32.mrf.mxu1 }
 0x130   : > { %v297_v44 = vadd.f32 %v296_v43, %v262_v42  ;;  %v283_v45 = vpop.f32.mrf.mxu0 }
 0x131   : > { %v284_v46 = vadd.f32 %v283_v45, %v262_v42 }
 0x132   : > { %v301_v47 = vmax.f32 %v297_v44, 0.0 }
 0x133   : > { %v300_v48 = vmax.f32 %v284_v46, 0.0 }
 0x135   : > { %v410_v49 = vpack.i.bf16 %v301_v47, %v300_v48 }
 0x137   : > { %v298_v50 = vpop.f32.mrf.mxu1  ;;  %411 = vrot.lane.b32.xlu2 %v410_v49, %s436_s25 }
 0x138   : > { %v285_v51 = vpop.f32.mrf.mxu0 }
 0x191   : > { %v412_v52 = vpop.permute.xlu2 %411 }
 0x192   : > { %v414_v53 = vunpack.i.h.bf16 %v412_v52  ;;  %v413_v54 = vunpack.i.l.bf16 %v412_v52 }
 0x194   : > { %v313_v55 = vmax.f32 %v301_v47, %v414_v53  ;;  %v309_v56 = vsel %vm180_vm8, %v413_v54, %v414_v53 }
 0x195   : > { %v311_v57 = vmax.f32 %v300_v48, %v309_v56 }
 0x197   : > { %v415_v58 = vpack.i.bf16 %v313_v55, %v311_v57 }
 0x199   : > { %416 = vrot.lane.b32.xlu0 %v415_v58, %s435_s24 }
 0x20b   : > { %v417_v59 = vpop.permute.xlu0 %416 }
 0x20c   : > { %v419_v60 = vunpack.i.h.bf16 %v417_v59  ;;  %v418_v61 = vunpack.i.l.bf16 %v417_v59 }
 0x20e   : > { %v321_v62 = vsel %vm192_vm7, %v418_v61, %v419_v60 }
 0x20f   : > { %v323_v63 = vmax.f32 %v311_v57, %v321_v62 }
 0x211   : > { %v324_v0 = vpack.c.bf16 %v323_v63, %v323_v63 }
 0x213   : > { %325 = vst [vmem:[%s168_s6] sm:$0xf] %v324_v0 }
 0x214 PF: > { %s13_s12 = sadd.s32 1, %s427_s12  }
 0x215   : > { %p10_p4 = scmp.ge.s32.totalorder %s13_s12, 4  }
 0x217   :  { %12 = sbr.rel (!%p10_p4) target bundleno = 1 (0x1), region = 62 }

// kernel: custom_cnn_forward.5
= control target key start
LH: loop header
LB: loop body
LE: loop exit
PB: predicated region body
PF: predicated region fallthrough
CT: control target
= control target key end

     0   :  { %s871_s0 = inlined_call_operand.vmem [shape: bf16[2,128], index: 0, kind: input, shape index: {}]   ;;  %s872_s1 = inlined_call_operand.vmem [shape: bf16[128,256], index: 1, kind: input, shape index: {}]   ;;  %s873_s2 = inlined_call_operand.vmem [shape: f32[1,256], index: 2, kind: input, shape index: {}]   ;;  %s874_s3 = inlined_call_operand.vmem [shape: bf16[256,128], index: 3, kind: input, shape index: {}]   ;;  %s875_s4 = inlined_call_operand.vmem [shape: f32[1,128], index: 4, kind: input, shape index: {}]   ;;  %s876_s5 = inlined_call_operand.vmem [shape: bf16[128,128], index: 5, kind: input, shape index: {}]   ;;  %s877_s6 = inlined_call_operand.vmem [shape: f32[1,128], index: 6, kind: input, shape index: {}]   ;;  %s878_s7 = inlined_call_operand.hbm [shape: f32[2,128], index: 7, kind: output, shape index: {}]  }
   0x1   :  { %v476_v0 = vld [vmem:[%s872_s1 + $0x70] sm:$0xf]  ;;  %v593_v1 = vld [vmem:[%s872_s1 + $0x74] sm:$0xf0]  ;;  %v592_v2 = vld [vmem:[%s872_s1 + $0x74] sm:$0xf] }
   0x2   :  { %v477_v3 = vor.u32 %v593_v1, %v476_v0  ;;  %v478_v4 = vld [vmem:[%s872_s1 + $0x78] sm:$0xf0]  ;;  %v468_v5 = vld [vmem:[%s872_s1 + $0x60] sm:$0xf]  ;;  %v591_v6 = vld [vmem:[%s872_s1 + $0x64] sm:$0xf0] }
   0x3   :  { %v481_v7 = vor.u32 %v592_v2, %v478_v4  ;;  %v590_v8 = vld [vmem:[%s872_s1 + $0x64] sm:$0xf]  ;;  %v470_v9 = vld [vmem:[%s872_s1 + $0x68] sm:$0xf0]  ;;  %v469_v10 = vor.u32 %v591_v6, %v468_v5  ;;  %v460_v12 = vld [vmem:[%s872_s1 + $0x50] sm:$0xf] }
   0x4   :  { %130 = vmatpush.bf16.msra.mxu0 %v477_v3  ;;  %v473_v11 = vor.u32 %v590_v8, %v470_v9  ;;  %v589_v13 = vld [vmem:[%s872_s1 + $0x54] sm:$0xf0]  ;;  %v588_v14 = vld [vmem:[%s872_s1 + $0x54] sm:$0xf]  ;;  %v462_v15 = vld [vmem:[%s872_s1 + $0x58] sm:$0xf0] }
   0x5   :  { %143 = vmatpush.bf16.msra.mxu1 %v481_v7  ;;  %v461_v16 = vor.u32 %v589_v13, %v460_v12  ;;  %v465_v17 = vor.u32 %v588_v14, %v462_v15  ;;  %v452_v18 = vld [vmem:[%s872_s1 + $0x40] sm:$0xf]  ;;  %v587_v19 = vld [vmem:[%s872_s1 + $0x44] sm:$0xf0]  ;;  %v586_v20 = vld [vmem:[%s872_s1 + $0x44] sm:$0xf] }
   0x6   :  { %v454_v21 = vld [vmem:[%s872_s1 + $0x48] sm:$0xf0]  ;;  %v453_v22 = vor.u32 %v587_v19, %v452_v18  ;;  %v601_v23 = vld [vmem:[%s874_s3 + $0x38] sm:$0xff]  ;;  %v444_v26 = vld [vmem:[%s872_s1 + $0x30] sm:$0xf] }
   0x7   :  { %v609_v24 = vld [vmem:[%s874_s3 + $0x78] sm:$0xff]  ;;  %v457_v25 = vor.u32 %v586_v20, %v454_v21  ;;  %v584_v28 = vld [vmem:[%s872_s1 + $0x34] sm:$0xf]  ;;  %292 = vmatpush.bf16.msra.mxu2 %v601_v23  ;;  %v436_v33 = vld [vmem:[%s872_s1 + $0x20] sm:$0xf] }
   0x8   :  { %131 = vmatpush.bf16.msra.mxu0 %v469_v10  ;;  %v585_v27 = vld [vmem:[%s872_s1 + $0x34] sm:$0xf0]  ;;  %v446_v29 = vld [vmem:[%s872_s1 + $0x38] sm:$0xf0]  ;;  %305 = vmatpush.bf16.msra.mxu3 %v609_v24  ;;  %v600_v30 = vld [vmem:[%s874_s3 + $0x30] sm:$0xff] }
   0x9   :  { %144 = vmatpush.bf16.msra.mxu1 %v473_v11  ;;  %v608_v31 = vld [vmem:[%s874_s3 + $0x70] sm:$0xff]  ;;  %v445_v32 = vor.u32 %v585_v27, %v444_v26  ;;  %v449_v34 = vor.u32 %v584_v28, %v446_v29  ;;  %v583_v35 = vld [vmem:[%s872_s1 + $0x24] sm:$0xf0]  ;;  %v582_v36 = vld [vmem:[%s872_s1 + $0x24] sm:$0xf] }
   0xc   :  { %132 = vmatpush.bf16.msra.mxu0 %v461_v16 }
   0xd   :  { %145 = vmatpush.bf16.msra.mxu1 %v465_v17 }
  0x10   :  { %133 = vmatpush.bf16.msra.mxu0 %v453_v22 }
  0x11   :  { %146 = vmatpush.bf16.msra.mxu1 %v457_v25 }
  0x12   :  { %12 = vsyncpa [#allocation3], 0  ;;  %v438_v37 = vld [vmem:[%s872_s1 + $0x28] sm:$0xf0]  ;;  %293 = vmatpush.bf16.msra.mxu2 %v600_v30  ;;  %306 = vmatpush.bf16.msra.mxu3 %v608_v31  ;;  %v437_v40 = vor.u32 %v583_v35, %v436_v33  ;;  %v428_v42 = vld [vmem:[%s872_s1 + $0x10] sm:$0xf] }
  0x13   :  { %v599_v38 = vld [vmem:[%s874_s3 + $0x28] sm:$0xff]  ;;  %v441_v41 = vor.u32 %v582_v36, %v438_v37  ;;  %v581_v43 = vld [vmem:[%s872_s1 + $0x14] sm:$0xf0]  ;;  %v580_v44 = vld [vmem:[%s872_s1 + $0x14] sm:$0xf]  ;;  %s647_s24 = smov [#allocation2]  }
  0x14   :  { %v607_v39 = vld [vmem:[%s874_s3 + $0x68] sm:$0xff]  ;;  %134 = vmatpush.bf16.msra.mxu0 %v445_v32  ;;  %v430_v45 = vld [vmem:[%s872_s1 + $0x18] sm:$0xf0]  ;;  %v598_v46 = vld [vmem:[%s874_s3 + $0x20] sm:$0xff]  ;;  %v429_v48 = vor.u32 %v581_v43, %v428_v42 }
  0x15   :  { %147 = vmatpush.bf16.msra.mxu1 %v449_v34  ;;  %v606_v47 = vld [vmem:[%s874_s3 + $0x60] sm:$0xff]  ;;  %v433_v49 = vor.u32 %v580_v44, %v430_v45  ;;  %v579_v51 = vld [vmem:[%s872_s1 + $0x4] sm:$0xf0]  ;;  %v422_v53 = vld [vmem:[%s872_s1 + $0x8] sm:$0xf0] }
  0x16   :  { %294 = vmatpush.bf16.msra.mxu2 %v599_v38  ;;  %307 = vmatpush.bf16.msra.mxu3 %v607_v39  ;;  %v420_v50 = vld [vmem:[%s872_s1] sm:$0xf]  ;;  %v578_v52 = vld [vmem:[%s872_s1 + $0x4] sm:$0xf]  ;;  %v597_v54 = vld [vmem:[%s874_s3 + $0x18] sm:$0xff] }
  0x17   :  { %v605_v55 = vld [vmem:[%s874_s3 + $0x58] sm:$0xff]  ;;  %v421_v56 = vor.u32 %v579_v51, %v420_v50  ;;  %v425_v57 = vor.u32 %v578_v52, %v422_v53  ;;  %v596_v58 = vld [vmem:[%s874_s3 + $0x10] sm:$0xff]  ;;  %v27_v60 = vld [vmem:[%s871_s0] sm:$0x1]  ;;  %s409_s0 = sshll.u32 %s878_s7, 4  ;;  %s410_s0 = int_to_ptr.hbm [resolvable:$true] %s409_s0 }
  0x18   :  { %135 = vmatpush.bf16.msra.mxu0 %v437_v40  ;;  %v604_v59 = vld [vmem:[%s874_s3 + $0x50] sm:$0xff]  ;;  %v595_v61 = vld [vmem:[%s874_s3 + $0x8] sm:$0xff]  ;;  %v594_v63 = vld [vmem:[%s874_s3] sm:$0xff] }
  0x19   :  { %148 = vmatpush.bf16.msra.mxu1 %v441_v41  ;;  %v603_v62 = vld [vmem:[%s874_s3 + $0x48] sm:$0xff]  ;;  %v602_v0 = vld [vmem:[%s874_s3 + $0x40] sm:$0xff]  ;;  %v617_v1 = vld [vmem:[%s876_s5 + $0x38] sm:$0xff] }
  0x1a   :  { %295 = vmatpush.bf16.msra.mxu2 %v598_v46  ;;  %308 = vmatpush.bf16.msra.mxu3 %v606_v47  ;;  %v616_v2 = vld [vmem:[%s876_s5 + $0x30] sm:$0xff]  ;;  %v615_v3 = vld [vmem:[%s876_s5 + $0x28] sm:$0xff]  ;;  %v614_v4 = vld [vmem:[%s876_s5 + $0x20] sm:$0xff] }
  0x1b   :  { %v613_v5 = vld [vmem:[%s876_s5 + $0x18] sm:$0xff]  ;;  %v44_v6 = vld [vmem:[%s873_s2] sm:$0x3]  ;;  %v612_v7 = vld [vmem:[%s876_s5 + $0x10] sm:$0xff] }
  0x1c   :  { %136 = vmatpush.bf16.msra.mxu0 %v429_v48  ;;  %v46_v8 = vperm.slane %v44_v6, 0  ;;  %v47_v9 = vperm.slane %v44_v6, 1  ;;  %v611_v20 = vld [vmem:[%s876_s5 + $0x8] sm:$0xff]  ;;  %v610_v21 = vld [vmem:[%s876_s5] sm:$0xff]  ;;  %s407_s5 = sshll.u32 %s647_s24, 4  ;;  %s408_s5 = int_to_ptr.vmem [resolvable:$true] %s407_s5 }
  0x1d   :  { %149 = vmatpush.bf16.msra.mxu1 %v433_v49  ;;  %v619_v22 = vld [vmem:[%s875_s4] ss:$0 sm:$0xff] }
  0x1e   :  { %296 = vmatpush.bf16.msra.mxu2 %v597_v54  ;;  %309 = vmatpush.bf16.msra.mxu3 %v605_v55  ;;  %v620_v31 = vld [vmem:[%s877_s6] ss:$0 sm:$0xff] }
  0x20   :  { %137 = vmatpush.bf16.msra.mxu0 %v421_v56 }
  0x21   :  { %150 = vmatpush.bf16.msra.mxu1 %v425_v57 }
  0x22   :  { %297 = vmatpush.bf16.msra.mxu2 %v596_v58  ;;  %310 = vmatpush.bf16.msra.mxu3 %v604_v59 }
  0x23   :  { %138 = vmatmul.bf16.vlgmr.msra.gmra.mxu0 %v27_v60 }
  0x24   :  { %151 = vmatmul.bf16.vlgmr.msra.gmra.mxu1 %v27_v60  ;;  %388 = vmatpush.bf16.msrb.mxu0 %v617_v1 }
  0x26   :  { %298 = vmatpush.bf16.msra.mxu2 %v595_v61  ;;  %311 = vmatpush.bf16.msra.mxu3 %v603_v62 }
  0x28   :  { %389 = vmatpush.bf16.msrb.mxu0 %v616_v2 }
  0x2a   :  { %299 = vmatpush.bf16.msra.mxu2 %v594_v63  ;;  %312 = vmatpush.bf16.msra.mxu3 %v602_v0 }
  0x2c   :  { %390 = vmatpush.bf16.msrb.mxu0 %v615_v3 }
  0x30   :  { %391 = vmatpush.bf16.msrb.mxu0 %v614_v4 }
  0x34   :  { %392 = vmatpush.bf16.msrb.mxu0 %v613_v5 }
  0x38   :  { %393 = vmatpush.bf16.msrb.mxu0 %v612_v7 }
  0x3c   :  { %394 = vmatpush.bf16.msrb.mxu0 %v611_v20 }
  0x40   :  { %395 = vmatpush.bf16.msrb.mxu0 %v610_v21 }
  0xa0   :  { %v139_v10 = vpop.f32.mrf.mxu0 }
  0xa1   :  { %v140_v11 = vadd.f32 %v139_v10, %v46_v8  ;;  %v152_v12 = vpop.f32.mrf.mxu1 }
  0xa2   :  { %v153_v13 = vadd.f32 %v152_v12, %v47_v9 }
  0xa3   :  { %v156_v14 = vmax.f32 %v140_v11, 0.0 }
  0xa4   :  { %v157_v15 = vmax.f32 %v153_v13, 0.0 }
  0xa5   :  { %v158_v16 = vpack.c.bf16 %v156_v14, %v156_v14 }
  0xa6   :  { %v159_v17 = vpack.c.bf16 %v157_v15, %v157_v15 }
  0xa7   :  { %300 = vmatmul.bf16.vlgmr.msra.gmra.mxu2 %v158_v16 }
  0xa8   :  { %313 = vmatmul.bf16.vlgmr.msra.gmra.mxu3 %v159_v17  ;;  %v141_v18 = vpop.f32.mrf.mxu0 }
  0xa9   :  { %v154_v19 = vpop.f32.mrf.mxu1 }
 0x12a   :  { %v301_v23 = vpop.f32.mrf.mxu2 }
 0x12b   :  { %v302_v24 = vadd.f32 %v619_v22, %v301_v23  ;;  %v314_v25 = vpop.f32.mrf.mxu3 }
 0x12d   :  { %v315_v26 = vadd.f32 %v314_v25, %v302_v24 }
 0x12f   :  { %v318_v27 = vmax.f32 %v315_v26, 0.0 }
 0x131   :  { %v319_v28 = vpack.c.bf16 %v318_v27, %v318_v27 }
 0x132   :  { %v303_v29 = vpop.f32.mrf.mxu2 }
 0x133   :  { %v316_v30 = vpop.f32.mrf.mxu3  ;;  %396 = vmatmul.bf16.vlgmr.msrb.gmra.mxu0 %v319_v28 }
 0x1b0   :  { %v397_v32 = vpop.f32.mrf.mxu0 }
 0x1b1   :  { %v398_v33 = vadd.f32 %v620_v31, %v397_v32 }
 0x1b3   :  { %401 = vst [vmem:[#allocation2] sm:$0x3] %v398_v33 }
 0x1b4   :  { %412 = dma.vmem_to_hbm [thread:$0]  %s408_s5, 32, %s410_s0, [#allocation3]  }
 0x1b8   :  { %v399_v34 = vpop.f32.mrf.mxu0 }
 0x1b9   :  { %645 = dma.done.wait [#allocation3], 32  }
 0x1ba   :  { %646 = vsyncadd [#allocation3], 4294967264 }
 0x1bb   :  { %417 = vsyncpa [#allocation3], 1 }

</bundles_post_ra>
